<compile_context>
chip_gen: v7x
topology: tpu7x:2x2x1
jax: 0.10.0
libtpu: 0.0.40
codegen_flags: <defaults>
</compile_context>

<pallas_src>
import functools

import jax
import jax.numpy as jnp
from jax.experimental import pallas as pl
from jax.experimental.pallas import tpu as pltpu

_LANE = 128
_SUBLANE = 8


def _vmem_budget():
    """(block_footprint_budget_bytes, vmem_limit_bytes) per TPU generation."""
    try:
        cap = pltpu.get_tpu_info().vmem_capacity_bytes
    except Exception:  # interpret mode / unknown chip
        cap = 64 * 1024 * 1024  # conservative: v7x per-TC VMEM
    # Footprint of the double-buffered in/out blocks; leave headroom for f32
    # intermediates and compiler scratch.
    budget = min(24 * 1024 * 1024, cap // 3)        # ~21 MiB v7x, 24 MiB v5e/v6e
    vmem_limit = min(48 * 1024 * 1024, cap // 2)    # 32 MiB v7x, 48 MiB v5e/v6e
    return budget, vmem_limit


# ------------------------- single-pass kernel (default) -------------------------

def _dice_kernel(x_ref, alpha_ref, out_ref, *, eps: float, batch: int):
    x = x_ref[...].astype(jnp.float32)          # (B, TILE_D)
    alpha = alpha_ref[...].astype(jnp.float32)  # (1, TILE_D)

    inv_b = 1.0 / batch
    mean = jnp.sum(x, axis=0, keepdims=True) * inv_b
    centered = x - mean
    # Centered (two-pass) biased variance; block is VMEM-resident so the extra
    # pass is VPU filler under the memory-bound regime.
    var = jnp.sum(centered * centered, axis=0, keepdims=True) * inv_b
    x_hat = centered * jax.lax.rsqrt(var + eps)

    # sigmoid(z) = 0.5 * (tanh(0.5 z) + 1): single EUP op instead of exp+divide.
    p = 0.5 * jnp.tanh(0.5 * x_hat) + 0.5

    # Folded output: p*x + (1-p)*alpha*x == x * (alpha + p*(1-alpha))
    out = x * (alpha + p * (1.0 - alpha))
    out_ref[...] = out.astype(out_ref.dtype)


# ------------------------- two-pass fallback (very large B) ---------------------

def _stats_kernel(x_ref, sum_ref, ssq_ref, *, batch: int, tile_b: int):
    i = pl.program_id(1)  # batch block index (reduction axis, last in grid)

    @pl.when(i == 0)
    def _():
        sum_ref[...] = jnp.zeros_like(sum_ref)
        ssq_ref[...] = jnp.zeros_like(ssq_ref)

    x = x_ref[...].astype(jnp.float32)          # (TILE_B, TILE_D)
    rows = i * tile_b + jax.lax.broadcasted_iota(jnp.int32, x.shape, 0)
    x = jnp.where(rows < batch, x, 0.0)         # mask OOB batch rows
    sum_ref[...] += jnp.sum(x, axis=0, keepdims=True)
    # TODO(synk): for extreme |mean|/std ratios, replace sum/sumsq with a
    # centered second stats pass (extra HBM read) to avoid cancellation.
    ssq_ref[...] += jnp.sum(x * x, axis=0, keepdims=True)


def _norm_kernel(x_ref, mean_ref, rstd_ref, alpha_ref, out_ref):
    x = x_ref[...].astype(jnp.float32)
    x_hat = (x - mean_ref[...]) * rstd_ref[...]
    p = 0.5 * jnp.tanh(0.5 * x_hat) + 0.5
    alpha = alpha_ref[...].astype(jnp.float32)
    out_ref[...] = (x * (alpha + p * (1.0 - alpha))).astype(out_ref.dtype)


# ------------------------------- wrapper ----------------------------------------

def dice_forward(x: jax.Array, alpha: jax.Array, eps: float = 1e-9,
                 tile_d: int | None = None, force_two_pass: bool = False) -> jax.Array:
    """x: (B, D), alpha: (D,). Matches Dice.forward in training mode."""
    B, D = x.shape
    assert alpha.shape == (D,)
    itemsize = jnp.dtype(x.dtype).itemsize
    budget, vmem_limit = _vmem_budget()
    alpha2d = alpha.reshape(1, D)
    n128 = pl.cdiv(D, _LANE)
    d_pad128 = n128 * _LANE

    # Bytes per feature lane for the single-pass path: 2 in + 2 out double buffers.
    per_lane_bytes = 4 * B * itemsize
    one_pass_ok = (not force_two_pass) and (per_lane_bytes * _LANE <= budget)

    if one_pass_ok:
        if tile_d is None:
            tile_d = (budget // per_lane_bytes) // _LANE * _LANE
            # Keep >= 2 feature blocks (megacore sharding on v7x) as long as each
            # block stays >= 512 lanes (>=~85% of HBM roofline on single-TC chips).
            if d_pad128 >= 2 * 512:
                tile_d = min(tile_d, pl.cdiv(n128, 2) * _LANE)
        else:
            tile_d = (tile_d // _LANE) * _LANE
        tile_d = max(_LANE, tile_d)
        if tile_d >= D:
            tile_d = D  # single block == full feature dim (always a legal block shape)

        kernel = functools.partial(_dice_kernel, eps=eps, batch=B)
        return pl.pallas_call(
            kernel,
            out_shape=jax.ShapeDtypeStruct((B, D), x.dtype),
            grid=(pl.cdiv(D, tile_d),),
            in_specs=[
                pl.BlockSpec((B, tile_d), lambda j: (0, j)),
                pl.BlockSpec((1, tile_d), lambda j: (0, j)),
            ],
            out_specs=pl.BlockSpec((B, tile_d), lambda j: (0, j)),
            compiler_params=pltpu.CompilerParams(
                dimension_semantics=("parallel",),
                vmem_limit_bytes=vmem_limit,
            ),
        )(x, alpha2d)

    # --------- two-pass fallback: full (B, 128) column does not fit VMEM ---------
    tile_d_fb = D if D <= _LANE else min(512, d_pad128)
    nd = pl.cdiv(D, tile_d_fb)
    tile_b = budget // (4 * tile_d_fb * itemsize)
    tile_b = max(_SUBLANE, (tile_b // _SUBLANE) * _SUBLANE)
    if tile_b >= B:
        tile_b = B
    nb = pl.cdiv(B, tile_b)

    stats_kernel = functools.partial(_stats_kernel, batch=B, tile_b=tile_b)
    sums, ssqs = pl.pallas_call(
        stats_kernel,
        out_shape=(jax.ShapeDtypeStruct((1, D), jnp.float32),
                   jax.ShapeDtypeStruct((1, D), jnp.float32)),
        grid=(nd, nb),
        in_specs=[pl.BlockSpec((tile_b, tile_d_fb), lambda j, i: (i, j))],
        out_specs=(pl.BlockSpec((1, tile_d_fb), lambda j, i: (0, j)),
                   pl.BlockSpec((1, tile_d_fb), lambda j, i: (0, j))),
        compiler_params=pltpu.CompilerParams(
            dimension_semantics=("parallel", "arbitrary"),
            vmem_limit_bytes=vmem_limit,
        ),
    )(x)

    inv_b = 1.0 / B
    mean = sums * inv_b                                   # (1, D) f32
    var = jnp.maximum(ssqs * inv_b - mean * mean, 0.0)    # biased variance
    rstd = jax.lax.rsqrt(var + eps)

    return pl.pallas_call(
        _norm_kernel,
        out_shape=jax.ShapeDtypeStruct((B, D), x.dtype),
        grid=(nd, nb),
        in_specs=[
            pl.BlockSpec((tile_b, tile_d_fb), lambda j, i: (i, j)),
            pl.BlockSpec((1, tile_d_fb), lambda j, i: (0, j)),
            pl.BlockSpec((1, tile_d_fb), lambda j, i: (0, j)),
            pl.BlockSpec((1, tile_d_fb), lambda j, i: (0, j)),
        ],
        out_specs=pl.BlockSpec((tile_b, tile_d_fb), lambda j, i: (i, j)),
        compiler_params=pltpu.CompilerParams(
            dimension_semantics=("parallel", "parallel"),
            vmem_limit_bytes=vmem_limit,
        ),
    )(x, mean, rstd, alpha2d)


def dice_reference(x, alpha, eps=1e-9):
    mean = jnp.mean(x, axis=0, keepdims=True)
    var = jnp.mean((x - mean) ** 2, axis=0, keepdims=True)
    x_hat = (x - mean) / jnp.sqrt(var + eps)
    p = jax.nn.sigmoid(x_hat)
    return p * x + (1.0 - p) * alpha[None, :] * x


if __name__ == "__main__":
    key = jax.random.PRNGKey(0)
    k1, k2, k3, k4, k5 = jax.random.split(key, 5)

    # Case 1: module-faithful toy shape (batch=8, input_dim=32, alpha init = 0).
    B, D = 8, 32
    x = jax.random.normal(k1, (B, D), dtype=jnp.float32)
    alpha = jnp.zeros((D,), dtype=jnp.float32)
    out = jax.block_until_ready(dice_forward(x, alpha))
    ref = dice_reference(x, alpha)
    assert out.shape == (B, D)
    assert jnp.allclose(out, ref, atol=1e-5, rtol=1e-5), "mismatch vs reference (case 1)"

    # Case 2: multi-block grid along D, nonzero alpha (tiling path, no padding).
    B2, D2 = 16, 384
    x2 = jax.random.normal(k2, (B2, D2), dtype=jnp.float32) * 2.0 + 0.5
    alpha2 = jax.random.normal(k3, (D2,), dtype=jnp.float32)
    out2 = jax.block_until_ready(dice_forward(x2, alpha2, tile_d=128))
    ref2 = dice_reference(x2, alpha2)
    assert jnp.allclose(out2, ref2, atol=1e-4, rtol=1e-4), "mismatch vs reference (case 2)"

    # Case 3: D not a multiple of 128 -> trailing partial feature block (masked store).
    B3, D3 = 8, 200
    x3 = jax.random.normal(k4, (B3, D3), dtype=jnp.float32)
    alpha3 = 0.1 * jnp.arange(D3, dtype=jnp.float32)
    out3 = jax.block_until_ready(dice_forward(x3, alpha3, tile_d=128))
    ref3 = dice_reference(x3, alpha3)
    assert jnp.allclose(out3, ref3, atol=1e-4, rtol=1e-4), "mismatch vs reference (case 3)"

    # Case 4: two-pass (batch-tiled) fallback path, forced at small shape.
    B4, D4 = 32, 256
    x4 = jax.random.normal(k5, (B4, D4), dtype=jnp.float32)
    alpha4 = jnp.full((D4,), 0.25, dtype=jnp.float32)
    out4 = jax.block_until_ready(dice_forward(x4, alpha4, force_two_pass=True))
    ref4 = dice_reference(x4, alpha4)
    assert jnp.allclose(out4, ref4, atol=1e-4, rtol=1e-4), "mismatch vs reference (case 4)"

    print("KERNEL_OK")
</pallas_src>

<mosaic_0001>
module attributes {stable_mosaic.version = 11 : i64} {
  func.func @_dice_kernel(%arg0: i32, %arg1: memref<8x32xf32, #tpu.memory_space<vmem>>, %arg2: memref<1x32xf32, #tpu.memory_space<vmem>>, %arg3: memref<8x32xf32, #tpu.memory_space<vmem>>) attributes {dimension_semantics = [#tpu.dimension_semantics<parallel>], iteration_bounds = array<i64: 1>, scalar_prefetch = 0 : i64, scratch_operands = 0 : i64, tpu.core_type = #tpu.core_type<tc>, window_params = [{transform_indices = @transform_0, window_bounds = array<i64: 8, 32>}, {transform_indices = @transform_1, window_bounds = array<i64: 1, 32>}, {transform_indices = @transform_2, window_bounds = array<i64: 8, 32>}]} {
    %c0 = arith.constant 0 : index
    %c0_0 = arith.constant 0 : index
    %0 = vector.load %arg1[%c0, %c0_0] : memref<8x32xf32, #tpu.memory_space<vmem>>, vector<8x32xf32>
    %c0_1 = arith.constant 0 : index
    %c0_2 = arith.constant 0 : index
    %1 = vector.load %arg2[%c0_1, %c0_2] : memref<1x32xf32, #tpu.memory_space<vmem>>, vector<1x32xf32>
    %cst = arith.constant dense<0.000000e+00> : vector<32xf32>
    %2 = vector.multi_reduction <add>, %0, %cst [0] : vector<8x32xf32> to vector<32xf32>
    %3 = vector.shape_cast %2 : vector<32xf32> to vector<1x32xf32>
    %cst_3 = arith.constant 1.250000e-01 : f32
    %4 = vector.broadcast %cst_3 : f32 to vector<1x32xf32>
    %5 = arith.mulf %3, %4 : vector<1x32xf32>
    %6 = vector.broadcast %5 : vector<1x32xf32> to vector<8x32xf32>
    %7 = arith.subf %0, %6 : vector<8x32xf32>
    %8 = arith.mulf %7, %7 : vector<8x32xf32>
    %cst_4 = arith.constant dense<0.000000e+00> : vector<32xf32>
    %9 = vector.multi_reduction <add>, %8, %cst_4 [0] : vector<8x32xf32> to vector<32xf32>
    %10 = vector.shape_cast %9 : vector<32xf32> to vector<1x32xf32>
    %cst_5 = arith.constant 1.250000e-01 : f32
    %11 = vector.broadcast %cst_5 : f32 to vector<1x32xf32>
    %12 = arith.mulf %10, %11 : vector<1x32xf32>
    %cst_6 = arith.constant 9.99999971E-10 : f32
    %13 = vector.broadcast %cst_6 : f32 to vector<1x32xf32>
    %14 = arith.addf %12, %13 : vector<1x32xf32>
    %15 = math.rsqrt %14 : vector<1x32xf32>
    %16 = vector.broadcast %15 : vector<1x32xf32> to vector<8x32xf32>
    %17 = arith.mulf %7, %16 : vector<8x32xf32>
    %cst_7 = arith.constant 5.000000e-01 : f32
    %18 = vector.broadcast %cst_7 : f32 to vector<8x32xf32>
    %19 = arith.mulf %18, %17 : vector<8x32xf32>
    %20 = math.tanh %19 : vector<8x32xf32>
    %cst_8 = arith.constant 5.000000e-01 : f32
    %21 = vector.broadcast %cst_8 : f32 to vector<8x32xf32>
    %22 = arith.mulf %21, %20 : vector<8x32xf32>
    %cst_9 = arith.constant 5.000000e-01 : f32
    %23 = vector.broadcast %cst_9 : f32 to vector<8x32xf32>
    %24 = arith.addf %22, %23 : vector<8x32xf32>
    %cst_10 = arith.constant 1.000000e+00 : f32
    %25 = vector.broadcast %cst_10 : f32 to vector<1x32xf32>
    %26 = arith.subf %25, %1 : vector<1x32xf32>
    %27 = vector.broadcast %26 : vector<1x32xf32> to vector<8x32xf32>
    %28 = arith.mulf %24, %27 : vector<8x32xf32>
    %29 = vector.broadcast %1 : vector<1x32xf32> to vector<8x32xf32>
    %30 = arith.addf %29, %28 : vector<8x32xf32>
    %31 = arith.mulf %0, %30 : vector<8x32xf32>
    %c0_11 = arith.constant 0 : index
    %c0_12 = arith.constant 0 : index
    %32 = vector.load %arg3[%c0_11, %c0_12] : memref<8x32xf32, #tpu.memory_space<vmem>>, vector<8x32xf32>
    tpu.vector_store %arg3[%c0_11, %c0_12], %31 {strides = array<i32>} : memref<8x32xf32, #tpu.memory_space<vmem>>, vector<8x32xf32>,
    return
  }
  func.func @transform_0(%arg0: i32) -> (i32, i32) {
    %c0_i32 = arith.constant 0 : i32
    %c0_i32_0 = arith.constant 0 : i32
    return %c0_i32, %arg0 : i32, i32
  }
  func.func @transform_1(%arg0: i32) -> (i32, i32) {
    %c0_i32 = arith.constant 0 : i32
    %c0_i32_0 = arith.constant 0 : i32
    return %c0_i32, %arg0 : i32, i32
  }
  func.func @transform_2(%arg0: i32) -> (i32, i32) {
    %c0_i32 = arith.constant 0 : i32
    %c0_i32_0 = arith.constant 0 : i32
    return %c0_i32, %arg0 : i32, i32
  }
}

</mosaic_0001>

<bundles_post_ra>
// kernel: tpu_custom_call.1
= control target key start
LH: loop header
LB: loop body
LE: loop exit
PB: predicated region body
PF: predicated region fallthrough
CT: control target
= control target key end

     0   :  { %7 = vsyncpa [#allocation3], 0  ;;  %s185_s0 = inlined_call_operand.hbm [shape: f32[8,32], index: 0, kind: input, shape index: {}]   ;;  %s186_s1 = inlined_call_operand.vmem [shape: f32[1,32], index: 1, kind: input, shape index: {}]   ;;  %s187_s2 = inlined_call_operand.hbm [shape: f32[8,32], index: 2, kind: output, shape index: {}]  }
   0x1   :  { %8 = vsyncpa [#allocation4], 0  ;;  %s138_s9 = smov [#allocation2]   ;;  %s90_s13 = scalar_lea.hbm %s185_s0, 128 }
   0x2   :  { %s15_s10 = sshll.u32 %s138_s9, 4  ;;  %p91_p0 = scmp.ne.s32.totalorder %s185_s0, %s90_s13  ;;  %s16_s10 = int_to_ptr.vmem [resolvable:$true] %s15_s10 }
   0x3   :  { %p94_p1 = scmp.lt.u32.totalorder %s90_s13, %s185_s0 }
   0x5   :  { %p96_p2 = pnand %p94_p1, %p91_p0 }
   0x7   :  { %99 = shalt.err (!%p96_p2)
}
   0x8   :  { %s100_s18 = scalar_lea.vmem %s16_s10, 128  ;;  %p105_p4 = scmp.lt.s32.totalorder %s16_s10, %s16_s10 }
   0x9   :  { %p101_p3 = scmp.ne.s32.totalorder %s16_s10, %s100_s18  ;;  %p106_p5 = scmp.lt.s32.totalorder %s100_s18, %s100_s18 }
   0xb   :  { %p107_p6 = por %p106_p5, %p105_p4 }
   0xd   :  { %p108_p7 = pnand %p107_p6, %p101_p3 }
   0xf   :  { %111 = shalt.err (!%p108_p7)
}
  0x10   :  { %18 = dma.hbm_to_vmem [thread:$0]  %s185_s0, 128, %s16_s10, [#allocation3]  }
  0x11   :  { %134 = dma.done.wait [#allocation3], 128  }
  0x12   :  { %135 = vsyncadd [#allocation3], 4294967168  ;;  %vm26_vm0 = vcmask 261120   ;;  %v24_v0 = vld [vmem:[#allocation2] sm:$0xff]  ;;  %v54_v23 = vlaneseq  ;;  %s139_s22 = smov [#allocation5]  }
  0x13   :  { %v27_v1 = vsel %vm26_vm0, %v24_v0, 0.0  ;;  %v25_v25 = vld [vmem:[%s186_s1] sm:$0x1]  ;;  %s75_s23 = sshll.u32 %s139_s22, 4  ;;  %s76_s23 = int_to_ptr.vmem [resolvable:$true] %s75_s23 }
  0x14   :  { %v28_v2 = vrot.slane %v27_v1, 4  ;;  %v55_v24 = vshrl.u32 %v54_v23, 7  ;;  %v52_v26 = vsub.f32 1.0, %v25_v25  ;;  %s112_s24 = scalar_lea.vmem %s76_s23, 128  ;;  %p117_p9 = scmp.lt.s32.totalorder %s76_s23, %s76_s23 }
  0x15   :  { %p113_p8 = scmp.ne.s32.totalorder %s76_s23, %s112_s24  ;;  %p118_p10 = scmp.lt.s32.totalorder %s112_s24, %s112_s24 }
  0x16   :  { %v29_v3 = vadd.f32 %v28_v2, %v27_v1  ;;  %v56_v27 = vsub.s32 0, %v55_v24 }
  0x17   :  { %p119_p11 = por %p118_p10, %p117_p9 }
  0x18   :  { %v30_v4 = vrot.slane %v29_v3, 2  ;;  %v57_v30 = vrot.slane %v52_v26, %v56_v27  ;;  %v64_v32 = vrot.slane %v25_v25, %v56_v27 }
  0x19   :  { %p120_p12 = pnand %p119_p11, %p113_p8 }
  0x1a   :  { %v31_v5 = vadd.f32 %v30_v4, %v29_v3 }
  0x1c   :  { %v32_v6 = vrot.slane %v31_v5, 1 }
  0x1e   :  { %v33_v7 = vadd.f32 %v32_v6, %v31_v5 }
  0x20   :  { %v34_v8 = vmul.f32 0.125, %v33_v7 }
  0x22   :  { %v35_v9 = vsub.f32 %v24_v0, %v34_v8 }
  0x24   :  { %v36_v10 = vmul.f32 %v35_v9, %v35_v9 }
  0x26   :  { %v37_v11 = vsel %vm26_vm0, %v36_v10, 0.0 }
  0x27   :  { %v38_v12 = vrot.slane %v37_v11, 4 }
  0x29   :  { %v39_v13 = vadd.f32 %v38_v12, %v37_v11 }
  0x2b   :  { %v40_v14 = vrot.slane %v39_v13, 2 }
  0x2d   :  { %v41_v15 = vadd.f32 %v40_v14, %v39_v13 }
  0x2f   :  { %v42_v16 = vrot.slane %v41_v15, 1 }
  0x31   :  { %v43_v17 = vadd.f32 %v42_v16, %v41_v15 }
  0x33   :  { %v44_v18 = vmul.f32 0.125, %v43_v17 }
  0x35   :  { %v45_v19 = vadd.f32 1e-09, %v44_v18 }
  0x37   :  { %86 = vrsqrt.f32 %v45_v19 }
  0x41   :  { %v87_v20 = vpop.eup %86 }
  0x42   :  { %v47_v21 = vmul.f32 %v87_v20, %v35_v9 }
  0x44   :  { %v48_v22 = vmul.f32 0.5, %v47_v21 }
  0x46   :  { %88 = vtanh.f32 %v48_v22 }
  0x50   :  { %v89_v28 = vpop.eup %88 }
  0x51   :  { %v50_v29 = vmul.f32 0.5, %v89_v28 }
  0x53   :  { %v51_v31 = vadd.f32 0.5, %v50_v29 }
  0x55   :  { %v59_v33 = vmul.f32 %v57_v30, %v51_v31 }
  0x57   :  { %v66_v34 = vadd.f32 %v64_v32, %v59_v33 }
  0x59   :  { %v67_v35 = vmul.f32 %v66_v34, %v24_v0 }
  0x5b   :  { %68 = vst.msk [vmem:[#allocation5] sm:$0xff] %vm26_vm0, %v67_v35 }
  0x5c   :  { %123 = shalt.err (!%p120_p12)
}
  0x5d   :  { %s124_s26 = scalar_lea.hbm %s187_s2, 128 }
  0x5e   :  { %p125_p13 = scmp.ne.s32.totalorder %s187_s2, %s124_s26  ;;  %p128_p0 = scmp.lt.u32.totalorder %s124_s26, %s187_s2 }
  0x60   :  { %p130_p1 = pnand %p128_p0, %p125_p13 }
  0x62   :  { %133 = shalt.err (!%p130_p1)
}
  0x63   :  { %78 = dma.vmem_to_hbm [thread:$0]  %s76_s23, 128, %s187_s2, [#allocation4]  }
  0x64   :  { %136 = dma.done.wait [#allocation4], 128  }
  0x65   :  { %137 = vsyncadd [#allocation4], 4294967168 }
  0x66   :  { %82 = vsyncpa [#allocation3], 1 }
  0x67   :  { %83 = vsyncpa [#allocation4], 1 }

</bundles_post_ra>
